<compile_context>
chip_gen: v6e
topology: v6e:2x2x1
jax: 0.10.0
libtpu: 0.0.40
codegen_flags: <defaults>
</compile_context>

<pallas_src>
import jax
import jax.numpy as jnp
from jax.experimental import pallas as pl
from jax.experimental.pallas import tpu as pltpu

Z_DIM = 2       # matches `z_dim = 2` in the training script
X_DIM = 2       # generator output dimension (gaussian samples in R^2)
HIDDEN = 128


def _round_up(n, m):
    return ((n + m - 1) // m) * m


def _leaky_relu(h, slope=0.2):
    return jnp.where(h > 0, h, slope * h)


def transport_g_kernel(x_ref,
                       w1_ref, b1_ref,
                       w2_ref, b2_ref,
                       w3_ref, b3_ref,
                       w4_ref, b4_ref,
                       o_ref):
    # ---- Layer 1: Linear(Z_DIM, 128) + LeakyReLU, on the VPU -------------
    # K = Z_DIM = 2 would waste an entire MXU pass; expand as broadcast FMAs.
    x = x_ref[...]                                   # [TILE_B, Z_DIM] f32
    h = jnp.broadcast_to(b1_ref[...], (x.shape[0], HIDDEN))
    for k in range(Z_DIM):                           # static, unrolled
        h = h + x[:, k:k + 1] * w1_ref[k:k + 1, :]
    h = _leaky_relu(h)

    # ---- Layers 2/3: 128x128 MXU matmuls, bf16 operands, f32 accumulate --
    # Bias-add / LeakyReLU stay in f32 (cheap VPU filler; avoids bf16
    # elementwise on v5e).
    h = jnp.dot(h.astype(jnp.bfloat16), w2_ref[...],
                preferred_element_type=jnp.float32) + b2_ref[...]
    h = _leaky_relu(h)

    h = jnp.dot(h.astype(jnp.bfloat16), w3_ref[...],
                preferred_element_type=jnp.float32) + b3_ref[...]
    h = _leaky_relu(h)

    # ---- Layer 4: Linear(128, X_DIM), lane-dense via zero-padded W4/b4 ---
    y = jnp.dot(h.astype(jnp.bfloat16), w4_ref[...],
                preferred_element_type=jnp.float32) + b4_ref[...]

    o_ref[...] = y.astype(o_ref.dtype)               # full [TILE_B, 128] store


def transport_g_forward(x, params, *, tile_b=2048):
    """x: [B, Z_DIM] float32 -> [B, X_DIM] float32."""
    (w1, b1, w2, b2, w3, b3, w4, b4) = params
    B = x.shape[0]
    assert x.shape[1] == Z_DIM

    # Lane-dense output: zero-pad W4 / b4 to 128 output columns.
    w4p = jnp.zeros((HIDDEN, HIDDEN), jnp.float32).at[:, :X_DIM].set(w4)
    b4p = jnp.zeros((1, HIDDEN), jnp.float32).at[:, :X_DIM].set(b4)

    # Pre-cast MXU weights to bf16 once (f32 accumulation inside the kernel).
    w2b = w2.astype(jnp.bfloat16)
    w3b = w3.astype(jnp.bfloat16)
    w4b = w4p.astype(jnp.bfloat16)

    # Batch tile: multiple of 8 (sublane aligned), capped at `tile_b`.
    # Pad batch so every grid step sees a full tile (no ragged-tile codegen).
    tb = min(tile_b, _round_up(B, 8))
    Bp = _round_up(B, tb)
    if Bp != B:
        x = jnp.pad(x, ((0, Bp - B), (0, 0)))

    grid = (Bp // tb,)

    const = lambda a: pl.BlockSpec(a.shape, lambda i: (0,) * a.ndim)
    in_specs = [pl.BlockSpec((tb, Z_DIM), lambda i: (i, 0)),
                const(w1), const(b1),
                const(w2b), const(b2),
                const(w3b), const(b3),
                const(w4b), const(b4p)]
    out_spec = pl.BlockSpec((tb, HIDDEN), lambda i: (i, 0))

    out = pl.pallas_call(
        transport_g_kernel,
        out_shape=jax.ShapeDtypeStruct((Bp, HIDDEN), jnp.float32),
        grid=grid,
        in_specs=in_specs,
        out_specs=out_spec,
        compiler_params=pltpu.CompilerParams(
            dimension_semantics=("parallel",)),
    )(x, w1, b1, w2b, b2, w3b, b3, w4b, b4p)

    # Strip batch padding and the zero-padded output columns.
    return out[:B, :X_DIM]


def init_params(key, z_dim=Z_DIM, x_dim=X_DIM, hidden=HIDDEN):
    """Deterministic init mimicking PyTorch Linear default:
    U(-1/sqrt(fan_in), 1/sqrt(fan_in)) for both W and b."""
    dims = [(z_dim, hidden), (hidden, hidden), (hidden, hidden), (hidden, x_dim)]
    params = []
    keys = jax.random.split(key, 2 * len(dims))
    for i, (fan_in, fan_out) in enumerate(dims):
        bound = 1.0 / jnp.sqrt(fan_in)
        w = jax.random.uniform(keys[2 * i], (fan_in, fan_out), jnp.float32,
                               minval=-bound, maxval=bound)
        b = jax.random.uniform(keys[2 * i + 1], (1, fan_out), jnp.float32,
                               minval=-bound, maxval=bound)
        params += [w, b]
    return tuple(params)


def reference_forward(x, params):
    (w1, b1, w2, b2, w3, b3, w4, b4) = params
    h = _leaky_relu(x @ w1 + b1)
    h = _leaky_relu(h @ w2 + b2)
    h = _leaky_relu(h @ w3 + b3)
    return h @ w4 + b4


if __name__ == "__main__":
    key = jax.random.PRNGKey(0)
    k_x1, k_x2, k_x3, k_p = jax.random.split(key, 4)
    params = init_params(k_p)

    # bf16 MXU operands with f32 accumulation -> loosened tolerance vs the
    # full-f32 reference (plenty for a GAN generator).
    def check(x, **kw):
        y = jax.block_until_ready(transport_g_forward(x, params, **kw))
        y_ref = reference_forward(x, params)
        assert y.shape == (x.shape[0], X_DIM)
        assert jnp.allclose(y, y_ref, atol=2e-2, rtol=2e-2), \
            float(jnp.max(jnp.abs(y - y_ref)))

    # Single-tile case (batch multiple of 8).
    check(jax.random.normal(k_x1, (8, Z_DIM), jnp.float32))
    # Ragged batch -> exercises wrapper-side batch padding.
    check(jax.random.normal(k_x2, (10, Z_DIM), jnp.float32))
    # Multi-step grid (small tile forces 3 grid iterations).
    check(jax.random.normal(k_x3, (24, Z_DIM), jnp.float32), tile_b=8)

    print("KERNEL_OK")
</pallas_src>

<mosaic_0001>
module attributes {stable_mosaic.version = 11 : i64} {
  func.func @transport_g_kernel(%arg0: i32, %arg1: memref<8x2xf32, #tpu.memory_space<vmem>>, %arg2: memref<2x128xf32, #tpu.memory_space<vmem>>, %arg3: memref<1x128xf32, #tpu.memory_space<vmem>>, %arg4: memref<128x128xbf16, #tpu.memory_space<vmem>>, %arg5: memref<1x128xf32, #tpu.memory_space<vmem>>, %arg6: memref<128x128xbf16, #tpu.memory_space<vmem>>, %arg7: memref<1x128xf32, #tpu.memory_space<vmem>>, %arg8: memref<128x128xbf16, #tpu.memory_space<vmem>>, %arg9: memref<1x128xf32, #tpu.memory_space<vmem>>, %arg10: memref<8x128xf32, #tpu.memory_space<vmem>>) attributes {dimension_semantics = [#tpu.dimension_semantics<parallel>], iteration_bounds = array<i64: 1>, scalar_prefetch = 0 : i64, scratch_operands = 0 : i64, tpu.core_type = #tpu.core_type<tc>, window_params = [{transform_indices = @transform_0, window_bounds = array<i64: 8, 2>}, {pipeline_mode = #tpu.pipeline_mode<synchronous>, transform_indices = @transform_1, window_bounds = array<i64: 2, 128>}, {pipeline_mode = #tpu.pipeline_mode<synchronous>, transform_indices = @transform_2, window_bounds = array<i64: 1, 128>}, {pipeline_mode = #tpu.pipeline_mode<synchronous>, transform_indices = @transform_3, window_bounds = array<i64: 128, 128>}, {pipeline_mode = #tpu.pipeline_mode<synchronous>, transform_indices = @transform_4, window_bounds = array<i64: 1, 128>}, {pipeline_mode = #tpu.pipeline_mode<synchronous>, transform_indices = @transform_5, window_bounds = array<i64: 128, 128>}, {pipeline_mode = #tpu.pipeline_mode<synchronous>, transform_indices = @transform_6, window_bounds = array<i64: 1, 128>}, {pipeline_mode = #tpu.pipeline_mode<synchronous>, transform_indices = @transform_7, window_bounds = array<i64: 128, 128>}, {pipeline_mode = #tpu.pipeline_mode<synchronous>, transform_indices = @transform_8, window_bounds = array<i64: 1, 128>}, {transform_indices = @transform_9, window_bounds = array<i64: 8, 128>}]} {
    %c0 = arith.constant 0 : index
    %c0_0 = arith.constant 0 : index
    %0 = vector.load %arg1[%c0, %c0_0] : memref<8x2xf32, #tpu.memory_space<vmem>>, vector<8x2xf32>
    %c0_1 = arith.constant 0 : index
    %c0_2 = arith.constant 0 : index
    %1 = vector.load %arg3[%c0_1, %c0_2] : memref<1x128xf32, #tpu.memory_space<vmem>>, vector<1x128xf32>
    %2 = vector.shape_cast %1 : vector<1x128xf32> to vector<1x128xf32>
    %3 = vector.broadcast %2 : vector<1x128xf32> to vector<8x128xf32>
    %4 = vector.extract_strided_slice %0 {offsets = [0, 0], sizes = [8, 1], strides = [1, 1]} : vector<8x2xf32> to vector<8x1xf32>
    %c0_3 = arith.constant 0 : index
    %c0_4 = arith.constant 0 : index
    %5 = vector.load %arg2[%c0_3, %c0_4] : memref<2x128xf32, #tpu.memory_space<vmem>>, vector<1x128xf32>
    %6 = vector.broadcast %4 : vector<8x1xf32> to vector<8x128xf32>
    %7 = vector.broadcast %5 : vector<1x128xf32> to vector<8x128xf32>
    %8 = arith.mulf %6, %7 : vector<8x128xf32>
    %9 = arith.addf %3, %8 : vector<8x128xf32>
    %10 = vector.extract_strided_slice %0 {offsets = [0, 1], sizes = [8, 1], strides = [1, 1]} : vector<8x2xf32> to vector<8x1xf32>
    %c1 = arith.constant 1 : index
    %c0_5 = arith.constant 0 : index
    %11 = vector.load %arg2[%c1, %c0_5] : memref<2x128xf32, #tpu.memory_space<vmem>>, vector<1x128xf32>
    %12 = vector.broadcast %10 : vector<8x1xf32> to vector<8x128xf32>
    %13 = vector.broadcast %11 : vector<1x128xf32> to vector<8x128xf32>
    %14 = arith.mulf %12, %13 : vector<8x128xf32>
    %15 = arith.addf %9, %14 : vector<8x128xf32>
    %cst = arith.constant 0.000000e+00 : f32
    %16 = vector.broadcast %cst : f32 to vector<8x128xf32>
    %17 = arith.cmpf ogt, %15, %16 : vector<8x128xf32>
    %cst_6 = arith.constant 2.000000e-01 : f32
    %18 = vector.broadcast %cst_6 : f32 to vector<8x128xf32>
    %19 = arith.mulf %18, %15 : vector<8x128xf32>
    %20 = arith.select %17, %15, %19 : vector<8x128xi1>, vector<8x128xf32>
    %21 = arith.truncf %20 : vector<8x128xf32> to vector<8x128xbf16>
    %c0_7 = arith.constant 0 : index
    %c0_8 = arith.constant 0 : index
    %22 = vector.load %arg4[%c0_7, %c0_8] : memref<128x128xbf16, #tpu.memory_space<vmem>>, vector<128x128xbf16>
    %cst_9 = arith.constant dense<0.000000e+00> : vector<8x128xf32>
    %23 = tpu.matmul %21, %22, %cst_9 {dimension_numbers = #tpu.dot_dimension_numbers<[1], [0], [0], [1], [0, 0, 1, 1], [], []>} : vector<8x128xbf16>, vector<128x128xbf16>, vector<8x128xf32> -> vector<8x128xf32>
    %c0_10 = arith.constant 0 : index
    %c0_11 = arith.constant 0 : index
    %24 = vector.load %arg5[%c0_10, %c0_11] : memref<1x128xf32, #tpu.memory_space<vmem>>, vector<1x128xf32>
    %25 = vector.broadcast %24 : vector<1x128xf32> to vector<8x128xf32>
    %26 = arith.addf %23, %25 : vector<8x128xf32>
    %cst_12 = arith.constant 0.000000e+00 : f32
    %27 = vector.broadcast %cst_12 : f32 to vector<8x128xf32>
    %28 = arith.cmpf ogt, %26, %27 : vector<8x128xf32>
    %cst_13 = arith.constant 2.000000e-01 : f32
    %29 = vector.broadcast %cst_13 : f32 to vector<8x128xf32>
    %30 = arith.mulf %29, %26 : vector<8x128xf32>
    %31 = arith.select %28, %26, %30 : vector<8x128xi1>, vector<8x128xf32>
    %32 = arith.truncf %31 : vector<8x128xf32> to vector<8x128xbf16>
    %c0_14 = arith.constant 0 : index
    %c0_15 = arith.constant 0 : index
    %33 = vector.load %arg6[%c0_14, %c0_15] : memref<128x128xbf16, #tpu.memory_space<vmem>>, vector<128x128xbf16>
    %cst_16 = arith.constant dense<0.000000e+00> : vector<8x128xf32>
    %34 = tpu.matmul %32, %33, %cst_16 {dimension_numbers = #tpu.dot_dimension_numbers<[1], [0], [0], [1], [0, 0, 1, 1], [], []>} : vector<8x128xbf16>, vector<128x128xbf16>, vector<8x128xf32> -> vector<8x128xf32>
    %c0_17 = arith.constant 0 : index
    %c0_18 = arith.constant 0 : index
    %35 = vector.load %arg7[%c0_17, %c0_18] : memref<1x128xf32, #tpu.memory_space<vmem>>, vector<1x128xf32>
    %36 = vector.broadcast %35 : vector<1x128xf32> to vector<8x128xf32>
    %37 = arith.addf %34, %36 : vector<8x128xf32>
    %cst_19 = arith.constant 0.000000e+00 : f32
    %38 = vector.broadcast %cst_19 : f32 to vector<8x128xf32>
    %39 = arith.cmpf ogt, %37, %38 : vector<8x128xf32>
    %cst_20 = arith.constant 2.000000e-01 : f32
    %40 = vector.broadcast %cst_20 : f32 to vector<8x128xf32>
    %41 = arith.mulf %40, %37 : vector<8x128xf32>
    %42 = arith.select %39, %37, %41 : vector<8x128xi1>, vector<8x128xf32>
    %43 = arith.truncf %42 : vector<8x128xf32> to vector<8x128xbf16>
    %c0_21 = arith.constant 0 : index
    %c0_22 = arith.constant 0 : index
    %44 = vector.load %arg8[%c0_21, %c0_22] : memref<128x128xbf16, #tpu.memory_space<vmem>>, vector<128x128xbf16>
    %cst_23 = arith.constant dense<0.000000e+00> : vector<8x128xf32>
    %45 = tpu.matmul %43, %44, %cst_23 {dimension_numbers = #tpu.dot_dimension_numbers<[1], [0], [0], [1], [0, 0, 1, 1], [], []>} : vector<8x128xbf16>, vector<128x128xbf16>, vector<8x128xf32> -> vector<8x128xf32>
    %c0_24 = arith.constant 0 : index
    %c0_25 = arith.constant 0 : index
    %46 = vector.load %arg9[%c0_24, %c0_25] : memref<1x128xf32, #tpu.memory_space<vmem>>, vector<1x128xf32>
    %47 = vector.broadcast %46 : vector<1x128xf32> to vector<8x128xf32>
    %48 = arith.addf %45, %47 : vector<8x128xf32>
    %c0_26 = arith.constant 0 : index
    %c0_27 = arith.constant 0 : index
    %49 = vector.load %arg10[%c0_26, %c0_27] : memref<8x128xf32, #tpu.memory_space<vmem>>, vector<8x128xf32>
    tpu.vector_store %arg10[%c0_26, %c0_27], %48 {strides = array<i32>} : memref<8x128xf32, #tpu.memory_space<vmem>>, vector<8x128xf32>,
    return
  }
  func.func @transform_0(%arg0: i32) -> (i32, i32) {
    %c0_i32 = arith.constant 0 : i32
    %c0_i32_0 = arith.constant 0 : i32
    return %arg0, %c0_i32 : i32, i32
  }
  func.func @transform_1(%arg0: i32) -> (i32, i32) {
    %c0_i32 = arith.constant 0 : i32
    %c0_i32_0 = arith.constant 0 : i32
    %c0_i32_1 = arith.constant 0 : i32
    return %c0_i32, %c0_i32_0 : i32, i32
  }
  func.func @transform_2(%arg0: i32) -> (i32, i32) {
    %c0_i32 = arith.constant 0 : i32
    %c0_i32_0 = arith.constant 0 : i32
    %c0_i32_1 = arith.constant 0 : i32
    return %c0_i32, %c0_i32_0 : i32, i32
  }
  func.func @transform_3(%arg0: i32) -> (i32, i32) {
    %c0_i32 = arith.constant 0 : i32
    %c0_i32_0 = arith.constant 0 : i32
    %c0_i32_1 = arith.constant 0 : i32
    return %c0_i32, %c0_i32_0 : i32, i32
  }
  func.func @transform_4(%arg0: i32) -> (i32, i32) {
    %c0_i32 = arith.constant 0 : i32
    %c0_i32_0 = arith.constant 0 : i32
    %c0_i32_1 = arith.constant 0 : i32
    return %c0_i32, %c0_i32_0 : i32, i32
  }
  func.func @transform_5(%arg0: i32) -> (i32, i32) {
    %c0_i32 = arith.constant 0 : i32
    %c0_i32_0 = arith.constant 0 : i32
    %c0_i32_1 = arith.constant 0 : i32
    return %c0_i32, %c0_i32_0 : i32, i32
  }
  func.func @transform_6(%arg0: i32) -> (i32, i32) {
    %c0_i32 = arith.constant 0 : i32
    %c0_i32_0 = arith.constant 0 : i32
    %c0_i32_1 = arith.constant 0 : i32
    return %c0_i32, %c0_i32_0 : i32, i32
  }
  func.func @transform_7(%arg0: i32) -> (i32, i32) {
    %c0_i32 = arith.constant 0 : i32
    %c0_i32_0 = arith.constant 0 : i32
    %c0_i32_1 = arith.constant 0 : i32
    return %c0_i32, %c0_i32_0 : i32, i32
  }
  func.func @transform_8(%arg0: i32) -> (i32, i32) {
    %c0_i32 = arith.constant 0 : i32
    %c0_i32_0 = arith.constant 0 : i32
    %c0_i32_1 = arith.constant 0 : i32
    return %c0_i32, %c0_i32_0 : i32, i32
  }
  func.func @transform_9(%arg0: i32) -> (i32, i32) {
    %c0_i32 = arith.constant 0 : i32
    %c0_i32_0 = arith.constant 0 : i32
    return %arg0, %c0_i32 : i32, i32
  }
}

</mosaic_0001>

<bundles_post_ra>
// kernel: tpu_custom_call.1
= control target key start
LH: loop header
LB: loop body
LE: loop exit
PB: predicated region body
PF: predicated region fallthrough
CT: control target
= control target key end

     0   :  { %14 = vsyncpa [#allocation3], 0  ;;  %s830_s0 = inlined_call_operand.vmem [shape: f32[8,2], index: 0, kind: input, shape index: {}]   ;;  %s831_s1 = inlined_call_operand.vmem [shape: f32[2,128], index: 1, kind: input, shape index: {}]   ;;  %s832_s2 = inlined_call_operand.vmem [shape: f32[1,128], index: 2, kind: input, shape index: {}]   ;;  %s833_s3 = inlined_call_operand.hbm [shape: bf16[128,128], index: 3, kind: input, shape index: {}]   ;;  %s834_s4 = inlined_call_operand.vmem [shape: f32[1,128], index: 4, kind: input, shape index: {}]   ;;  %s835_s5 = inlined_call_operand.hbm [shape: bf16[128,128], index: 5, kind: input, shape index: {}]   ;;  %s836_s6 = inlined_call_operand.vmem [shape: f32[1,128], index: 6, kind: input, shape index: {}]   ;;  %s837_s7 = inlined_call_operand.hbm [shape: bf16[128,128], index: 7, kind: input, shape index: {}]   ;;  %s838_s8 = inlined_call_operand.vmem [shape: f32[1,128], index: 8, kind: input, shape index: {}]   ;;  %s839_s9 = inlined_call_operand.hbm [shape: f32[8,128], index: 9, kind: output, shape index: {}]  }
   0x1   :  { %15 = vsyncpa [#allocation6], 0 }
   0x2   :  { %16 = vsyncpa [#allocation4], 0  ;;  %s707_s30 = smov [#allocation5]   ;;  %s708_s11 = smov [#allocation2]  }
   0x3   :  { %s42_s10 = sshll.u32 %s707_s30, 4  ;;  %s28_s12 = sshll.u32 %s708_s11, 4  ;;  %s43_s10 = int_to_ptr.vmem [resolvable:$true] %s42_s10  ;;  %s29_s12 = int_to_ptr.vmem [resolvable:$true] %s28_s12 }
   0x4   :  { %s629_s13 = scalar_lea.vmem %s43_s10, 1024  ;;  %p634_p1 = scmp.lt.s32.totalorder %s43_s10, %s43_s10 }
   0x5   :  { %p630_p0 = scmp.ne.s32.totalorder %s43_s10, %s629_s13  ;;  %p635_p2 = scmp.lt.s32.totalorder %s629_s13, %s629_s13 }
   0x7   :  { %p636_p3 = por %p635_p2, %p634_p1 }
   0x9   :  { %p637_p4 = pnand %p636_p3, %p630_p0 }
   0xb   :  { %640 = shalt.err (!%p637_p4)
}
   0xc   :  { %s709_s14 = smov 64   ;;  %s710_s15 = smov 4  }
   0xd   :  { %48 = dma.hbm_to_vmem [thread:$0]  %s835_s5, 1024, %s43_s10, [#allocation6], %s709_s14, %s709_s14, %s710_s15  }
   0xe   :  { %s649_s18 = scalar_lea.vmem %s29_s12, 1024  ;;  %p654_p6 = scmp.lt.s32.totalorder %s29_s12, %s29_s12 }
   0xf   :  { %p650_p5 = scmp.ne.s32.totalorder %s29_s12, %s649_s18  ;;  %p655_p7 = scmp.lt.s32.totalorder %s649_s18, %s649_s18 }
  0x11   :  { %p656_p8 = por %p655_p7, %p654_p6 }
  0x13   :  { %p657_p9 = pnand %p656_p8, %p650_p5 }
  0x15   :  { %660 = shalt.err (!%p657_p9)
}
  0x16   :  { %34 = dma.hbm_to_vmem [thread:$0]  %s833_s3, 1024, %s29_s12, [#allocation3], %s709_s14, %s709_s14, %s710_s15  }
  0x17   :  { %s711_s21 = smov [#allocation7]  }
  0x18   :  { %s56_s22 = sshll.u32 %s711_s21, 4  ;;  %s57_s22 = int_to_ptr.vmem [resolvable:$true] %s56_s22 }
  0x19   :  { %s669_s23 = scalar_lea.vmem %s57_s22, 1024  ;;  %p674_p11 = scmp.lt.s32.totalorder %s57_s22, %s57_s22 }
  0x1a   :  { %p670_p10 = scmp.ne.s32.totalorder %s57_s22, %s669_s23  ;;  %p675_p12 = scmp.lt.s32.totalorder %s669_s23, %s669_s23 }
  0x1c   :  { %p676_p13 = por %p675_p12, %p674_p11 }
  0x1e   :  { %p677_p0 = pnand %p676_p13, %p670_p10 }
  0x20   :  { %680 = shalt.err (!%p677_p0)
}
  0x21   :  { %62 = dma.hbm_to_vmem [thread:$0]  %s837_s7, 1024, %s57_s22, [#allocation6], %s709_s14, %s709_s14, %s710_s15  }
  0x22   :  { %701 = dma.done.wait [#allocation3], 1024  }
  0x23   :  { %702 = vsyncadd [#allocation3], 4294966272 }
  0x24   :  { %703 = dma.done.wait [#allocation6], 2048  }
  0x25   :  { %704 = vsyncadd [#allocation6], 4294965248  ;;  %v712_v0 = vmov 0   ;;  %v713_v1 = vmov 0.0   ;;  %v75_v2 = vld [vmem:[%s830_s0] sm:$0xff]  ;;  %v597_v3 = vld [vmem:[#allocation2 + $0x38] sm:$0xff]  }
  0x26   :  { %595 = vset.pattern.permute.xlu0 %v712_v0  ;;  %525 = vmatprep.subr.bf16.mxu0 %v713_v1  ;;  %v598_v4 = vld [vmem:[#allocation2 + $0x30] sm:$0xff]   ;;  %v714_v5 = vmov 1   ;;  %v599_v6 = vld [vmem:[#allocation2 + $0x28] sm:$0xff]   ;;  %vm715_vm0 = vmmov 0   ;;  %v600_v7 = vld [vmem:[#allocation2 + $0x20] sm:$0xff]   ;;  %s716_s12 = smov [#allocation8]  }
  0x27   :  { %545 = vmatprep.subr.bf16.mxu1 %v713_v1  ;;  %86 = vperm.xlu0 %595, %v75_v2   ;;  %v605_v8 = vld [vmem:[#allocation5 + $0x38] sm:$0xff]   ;;  %v606_v9 = vld [vmem:[#allocation5 + $0x30] sm:$0xff]   ;;  %v607_v11 = vld [vmem:[#allocation5 + $0x28] sm:$0xff]   ;;  %s458_s13 = sshll.u32 %s716_s12, 4  ;;  %s459_s13 = int_to_ptr.vmem [resolvable:$true] %s458_s13 }
  0x28   :  { %526 = vmatpush3.bf16.msra.mxu0 %v597_v3  ;;  %541 = vmatprep.mubr.msk.bf16.mxu0 %vm715_vm0, %v713_v1  ;;  %v601_v10 = vld [vmem:[#allocation2 + $0x18] sm:$0xff]   ;;  %v602_v12 = vld [vmem:[#allocation2 + $0x10] sm:$0xff]   ;;  %v608_v13 = vld [vmem:[#allocation5 + $0x20] sm:$0xff]   ;;  %p686_p2 = scmp.lt.s32.totalorder %s459_s13, %s459_s13 }
  0x29   :  { %527 = vmatprep.subr.bf16.mxu0 %v713_v1  ;;  %561 = vmatprep.mubr.msk.bf16.mxu1 %vm715_vm0, %v713_v1  ;;  %v603_v14 = vld [vmem:[#allocation2 + $0x8] sm:$0xff]   ;;  %v609_v15 = vld [vmem:[#allocation5 + $0x18] sm:$0xff]   ;;  %v604_v16 = vld [vmem:[#allocation2] sm:$0xff]  }
  0x2a   :  { %546 = vmatpush3.bf16.msra.mxu1 %v605_v8  ;;  %v610_v17 = vld [vmem:[#allocation5 + $0x10] sm:$0xff]   ;;  %v469_v18 = vld [vmem:[%s831_s1] ss:$0 sm:$0xff]  ;;  %v470_v22 = vld [vmem:[%s831_s1 + $0x1] ss:$0 sm:$0xff] }
  0x2b   :  { %596 = vset.pattern.permute.xlu0 %v714_v5  ;;  %547 = vmatprep.subr.bf16.mxu1 %v713_v1  ;;  %v468_v21 = vld [vmem:[%s832_s2] ss:$0 sm:$0xff]  ;;  %v611_v30 = vld [vmem:[#allocation5 + $0x8] sm:$0xff]   ;;  %v613_v32 = vld [vmem:[#allocation7 + $0x38] sm:$0xff]  }
  0x2c   :  { %97 = vperm.xlu0 %596, %v75_v2   ;;  %528 = vmatpush3.bf16.msra.mxu0 %v598_v4  ;;  %v612_v31 = vld [vmem:[#allocation5] sm:$0xff]   ;;  %v614_v33 = vld [vmem:[#allocation7 + $0x30] sm:$0xff]   ;;  %v615_v34 = vld [vmem:[#allocation7 + $0x28] sm:$0xff]  }
  0x2d   :  { %529 = vmatprep.subr.bf16.mxu0 %v713_v1  ;;  %v616_v35 = vld [vmem:[#allocation7 + $0x20] sm:$0xff]   ;;  %v617_v36 = vld [vmem:[#allocation7 + $0x18] sm:$0xff]   ;;  %v618_v37 = vld [vmem:[#allocation7 + $0x10] sm:$0xff]  }
  0x2e   :  { %548 = vmatpush3.bf16.msra.mxu1 %v606_v9  ;;  %v471_v38 = vld [vmem:[%s834_s4] ss:$0 sm:$0xff]  ;;  %v619_v47 = vld [vmem:[#allocation7 + $0x8] sm:$0xff]  }
  0x2f   :  { %549 = vmatprep.subr.bf16.mxu1 %v713_v1  ;;  %v620_v48 = vld [vmem:[#allocation7] sm:$0xff]  }
  0x30   :  { %530 = vmatpush3.bf16.msra.mxu0 %v599_v6  ;;  %v480_v49 = vld [vmem:[%s836_s6] ss:$0 sm:$0xff]  ;;  %s681_s6 = scalar_lea.vmem %s459_s13, 128 }
  0x31   :  { %531 = vmatprep.subr.bf16.mxu0 %v713_v1  ;;  %v489_v58 = vld [vmem:[%s838_s8] ss:$0 sm:$0xff]  ;;  %p682_p1 = scmp.ne.s32.totalorder %s459_s13, %s681_s6  ;;  %p687_p3 = scmp.lt.s32.totalorder %s681_s6, %s681_s6 }
  0x32   :  { %550 = vmatpush3.bf16.msra.mxu1 %v607_v11 }
  0x33   :  { %551 = vmatprep.subr.bf16.mxu1 %v713_v1  ;;  %p688_p4 = por %p687_p3, %p686_p2 }
  0x34   :  { %532 = vmatpush3.bf16.msra.mxu0 %v600_v7 }
  0x35   :  { %533 = vmatprep.subr.bf16.mxu0 %v713_v1  ;;  %p689_p5 = pnand %p688_p4, %p682_p1 }
  0x36   :  { %552 = vmatpush3.bf16.msra.mxu1 %v608_v13 }
  0x37   :  { %553 = vmatprep.subr.bf16.mxu1 %v713_v1 }
  0x38   :  { %534 = vmatpush3.bf16.msra.mxu0 %v601_v10 }
  0x39   :  { %535 = vmatprep.subr.bf16.mxu0 %v713_v1 }
  0x3a   :  { %554 = vmatpush3.bf16.msra.mxu1 %v609_v15 }
  0x3b   :  { %555 = vmatprep.subr.bf16.mxu1 %v713_v1 }
  0x3c   :  { %536 = vmatpush3.bf16.msra.mxu0 %v602_v12 }
  0x3d   :  { %537 = vmatprep.subr.bf16.mxu0 %v713_v1 }
  0x3e   :  { %556 = vmatpush3.bf16.msra.mxu1 %v610_v17 }
  0x3f   :  { %557 = vmatprep.subr.bf16.mxu1 %v713_v1 }
  0x40   :  { %538 = vmatpush3.bf16.msra.mxu0 %v603_v14 }
  0x41   :  { %539 = vmatprep.subr.bf16.mxu0 %v713_v1 }
  0x42   :  { %558 = vmatpush3.bf16.msra.mxu1 %v611_v30 }
  0x43   :  { %559 = vmatprep.subr.bf16.mxu1 %v713_v1 }
  0x44   :  { %540 = vmatpush3.bf16.msra.mxu0 %v604_v16 }
  0x45   :  { %565 = vmatprep.subr.bf16.mxu0 %v713_v1 }
  0x46   :  { %560 = vmatpush3.bf16.msra.mxu1 %v612_v31 }
  0xa2   :  { %v87_v19 = vpop.permute.xlu0 %86 }
  0xa3   :  { %v93_v20 = vmul.f32 %v469_v18, %v87_v19 }
  0xa5   :  { %v94_v24 = vadd.f32 %v468_v21, %v93_v20 }
  0xa7   :  { %v98_v23 = vpop.permute.xlu0 %97 }
  0xa8   :  { %v104_v25 = vmul.f32 %v470_v22, %v98_v23 }
  0xaa   :  { %v105_v26 = vadd.f32 %v104_v25, %v94_v24 }
  0xac   :  { %v107_v27 = vmul.f32 0.2, %v105_v26  ;;  %vm106_vm1 = vcmp.gt.f32.partialorder %v105_v26, 0.0 }
  0xae   :  { %v108_v28 = vsel %vm106_vm1, %v105_v26, %v107_v27 }
  0xaf   :  { %v109_v29 = vpack.c.bf16 %v108_v28, %v108_v28 }
  0xb1   :  { %542 = vmatmul.mubr.bf16.vlgmr.msra.gmra.mxu0 %v109_v29 }
  0xb2   :  { %581 = vmatprep.mubr.msk.bf16.mxu0 %vm715_vm0, %v713_v1  ;;  %566 = vmatpush3.bf16.msra.mxu0 %v613_v32 }
  0xb3   :  { %567 = vmatprep.subr.bf16.mxu0 %v713_v1 }
  0xb6   :  { %568 = vmatpush3.bf16.msra.mxu0 %v614_v33 }
  0xb7   :  { %569 = vmatprep.subr.bf16.mxu0 %v713_v1 }
  0xba   :  { %570 = vmatpush3.bf16.msra.mxu0 %v615_v34 }
  0xbb   :  { %571 = vmatprep.subr.bf16.mxu0 %v713_v1 }
  0xbe   :  { %572 = vmatpush3.bf16.msra.mxu0 %v616_v35 }
  0xbf   :  { %573 = vmatprep.subr.bf16.mxu0 %v713_v1 }
  0xc2   :  { %574 = vmatpush3.bf16.msra.mxu0 %v617_v36 }
  0xc3   :  { %575 = vmatprep.subr.bf16.mxu0 %v713_v1 }
  0xc6   :  { %576 = vmatpush3.bf16.msra.mxu0 %v618_v37 }
  0xc7   :  { %577 = vmatprep.subr.bf16.mxu0 %v713_v1 }
  0xca   :  { %578 = vmatpush3.bf16.msra.mxu0 %v619_v47 }
  0xcb   :  { %579 = vmatprep.subr.bf16.mxu0 %v713_v1 }
  0xce   :  { %580 = vmatpush3.bf16.msra.mxu0 %v620_v48 }
 0x171   :  { %v215_v39 = vpop.f32.mrf.mxu0 }
 0x172   :  { %v216_v40 = vadd.f32 %v471_v38, %v215_v39 }
 0x173   :  { %v543_v41 = vpop.f32.mrf.mxu0 }
 0x174   :  { %vm221_vm2 = vcmp.gt.f32.partialorder %v216_v40, 0.0  ;;  %v222_v42 = vmul.f32 0.2, %v216_v40 }
 0x175   :  { %v218_v43 = vpop.f32.mrf.mxu0 }
 0x176   :  { %v223_v44 = vsel %vm221_vm2, %v216_v40, %v222_v42 }
 0x177   :  { %v544_v45 = vpop.f32.mrf.mxu0  ;;  %v224_v46 = vpack.c.bf16 %v223_v44, %v223_v44 }
 0x179   :  { %562 = vmatmul.mubr.bf16.vlgmr.msra.gmra.mxu1 %v224_v46 }
 0x239   :  { %v330_v50 = vpop.f32.mrf.mxu1 }
 0x23a   :  { %v331_v51 = vadd.f32 %v480_v49, %v330_v50 }
 0x23b   :  { %v563_v52 = vpop.f32.mrf.mxu1 }
 0x23c   :  { %vm336_vm3 = vcmp.gt.f32.partialorder %v331_v51, 0.0  ;;  %v337_v53 = vmul.f32 0.2, %v331_v51 }
 0x23d   :  { %v333_v54 = vpop.f32.mrf.mxu1 }
 0x23e   :  { %v338_v55 = vsel %vm336_vm3, %v331_v51, %v337_v53 }
 0x23f   :  { %v339_v56 = vpack.c.bf16 %v338_v55, %v338_v55  ;;  %v564_v57 = vpop.f32.mrf.mxu1 }
 0x241   :  { %582 = vmatmul.mubr.bf16.vlgmr.msra.gmra.mxu0 %v339_v56 }
 0x301   :  { %v445_v59 = vpop.f32.mrf.mxu0 }
 0x302   :  { %v446_v60 = vadd.f32 %v489_v58, %v445_v59 }
 0x303   :  { %v583_v61 = vpop.f32.mrf.mxu0 }
 0x304   :  { %451 = vst [vmem:[#allocation8] sm:$0xff] %v446_v60 }
 0x305   :  { %v448_v62 = vpop.f32.mrf.mxu0 }
 0x306   :  { %692 = shalt.err (!%p689_p5)
}
 0x307   :  { %461 = dma.vmem_to_hbm [thread:$0]  %s459_s13, 128, %s839_s9, [#allocation4]   ;;  %v584_v63 = vpop.f32.mrf.mxu0 }
 0x308   :  { %705 = dma.done.wait [#allocation4], 128  }
 0x309   :  { %706 = vsyncadd [#allocation4], 4294967168 }
 0x30a   :  { %465 = vsyncpa [#allocation3], 1 }
 0x30b   :  { %466 = vsyncpa [#allocation6], 1 }
 0x30c   :  { %467 = vsyncpa [#allocation4], 1 }

</bundles_post_ra>
